<compile_context>
chip_gen: v7x
topology: tpu7x:2x2x1
jax: 0.10.0
libtpu: 0.0.40
codegen_flags: <defaults>
</compile_context>

<pallas_src>
import jax
import jax.numpy as jnp
from jax.experimental import pallas as pl
from jax.experimental.pallas import tpu as pltpu


_SQRT_HALF = 0.7071067811865476
_VMEM_SLACK = 8 << 20  # headroom for compiler-internal scratch


def _gelu_exact(x):
    # PyTorch nn.GELU() default: exact erf-based GELU, computed in f32.
    return 0.5 * x * (1.0 + jax.lax.erf(x * _SQRT_HALF))


def _round_up(x, m):
    return (x + m - 1) // m * m


def _vmem_capacity_bytes():
    try:
        return int(pltpu.get_tpu_info().vmem_capacity_bytes)
    except Exception:
        return 64 << 20  # conservative: assume v7x-style 64 MiB per TensorCore


def _vmem_budget_bytes():
    cap = _vmem_capacity_bytes()
    if cap >= (100 << 20):        # v5e / v6e: 128 MiB physical VMEM
        return 100 << 20
    return 52 << 20               # v7x: 64 MiB per TC; leave headroom


def _pick_tm(M, tile_m):
    """Row tile: bf16-sublane safe (x16) and >=2 row tiles when M is big enough."""
    tm = _round_up(min(tile_m, _round_up(M, 16)), 16)
    if M > 256 and _round_up(M, tm) // tm < 2:
        tm = _round_up(-(-M // 2), 16)   # split into (at least) 2 row tiles
    M_p = _round_up(M, tm)
    return tm, M_p


# ----------------------------------------------------------------------------
# Path 1: weights fully resident in VMEM (one HBM pass over W1/W2).
# ----------------------------------------------------------------------------
def mlp_resident_kernel(x_ref, w1_ref, b1_ref, w2_ref, b2_ref, o_ref):
    h = jnp.dot(x_ref[...], w1_ref[...], preferred_element_type=jnp.float32)
    h = _gelu_exact(h + b1_ref[...])
    # dropout p=0.0 -> identity
    y = jnp.dot(h.astype(jnp.bfloat16), w2_ref[...],
                preferred_element_type=jnp.float32)
    o_ref[...] = (y + b2_ref[...]).astype(o_ref.dtype)


# ----------------------------------------------------------------------------
# Path 2: hidden dimension streamed in tiles (fallback for very large H).
# ----------------------------------------------------------------------------
def mlp_streaming_kernel(x_ref, w1_ref, b1_ref, w2_ref, b2_ref, o_ref, acc_ref):
    hk = pl.program_id(1)

    h = jnp.dot(x_ref[...], w1_ref[...], preferred_element_type=jnp.float32)
    h = _gelu_exact(h + b1_ref[...])
    p = jnp.dot(h.astype(jnp.bfloat16), w2_ref[...],
                preferred_element_type=jnp.float32)

    @pl.when(hk == 0)
    def _():
        # First hidden tile: write partial product (+ b2) directly — no zero
        # fill and no read-modify-write on the accumulator.
        acc_ref[...] = p + b2_ref[...]

    @pl.when(hk > 0)
    def _():
        acc_ref[...] += p

    @pl.when(hk == pl.num_programs(1) - 1)
    def _():
        o_ref[...] = acc_ref[...].astype(o_ref.dtype)


def _resident_vmem_bytes(tm, C_in_p, H_p, C_out_p, out_itemsize):
    return (2 * tm * C_in_p * 2           # x tile (bf16, double-buffered)
            + 2 * C_in_p * H_p * 2        # W1 (bf16; default buffering counted)
            + 2 * H_p * 4                 # b1 (f32)
            + 2 * H_p * C_out_p * 2       # W2 (bf16)
            + 2 * C_out_p * 4             # b2 (f32)
            + 2 * tm * C_out_p * out_itemsize   # out tile
            + tm * H_p * 6)               # fc1 intermediate: f32 + bf16 copy


def _streaming_vmem_bytes(tm, th, C_in_p, C_out_p, out_itemsize):
    return (2 * tm * C_in_p * 2           # x tile (bf16)
            + 2 * C_in_p * th * 2         # W1 H-tile (bf16)
            + 2 * th * 4                  # b1 tile (f32)
            + 2 * th * C_out_p * 2        # W2 H-tile (bf16)
            + 2 * C_out_p * 4             # b2 (f32)
            + 2 * tm * C_out_p * out_itemsize   # out tile
            + tm * C_out_p * 4            # f32 accumulator scratch
            + tm * th * 6)                # fc1 intermediate: f32 + bf16 copy


def mlp_pallas(x, w1, b1, w2, b2, *, tile_m=None, tile_h=None,
               force_streaming=False):
    """x: (B, N, C_in).  w1: (C_in, H), b1: (1,H)|(H,), w2: (H, C_out), b2: (1,C_out)|(C_out,).

    Returns (B, N, C_out) = GELU(x @ w1 + b1) @ w2 + b2  (dropout p=0 is identity).
    """
    orig_dtype = x.dtype
    B, N, C_in = x.shape
    H = w1.shape[1]
    C_out = w2.shape[1]
    M = B * N
    out_itemsize = jnp.dtype(orig_dtype).itemsize
    budget = _vmem_budget_bytes()

    # ---- lane-aligned padded channel sizes -----------------------------------
    C_in_p = _round_up(C_in, 128)
    C_out_p = _round_up(C_out, 128)

    # ---- choose path: weight-resident if W1+W2 (+intermediates) fit VMEM ----
    tm_res, M_p_res = _pick_tm(M, tile_m if tile_m is not None else 512)
    H_p_res = _round_up(H, 128)
    resident_fits = (_resident_vmem_bytes(tm_res, C_in_p, H_p_res, C_out_p,
                                          out_itemsize) + _VMEM_SLACK <= budget)
    use_resident = resident_fits and not force_streaming

    # ---- pad (zero padding is exact for this MLP) and cast MXU operands -----
    def _pad_inputs(M_p, H_p):
        x2 = jnp.pad(x.reshape(M, C_in), ((0, M_p - M), (0, C_in_p - C_in)))
        x2 = x2.astype(jnp.bfloat16)
        w1_p = jnp.pad(w1, ((0, C_in_p - C_in), (0, H_p - H))).astype(jnp.bfloat16)
        w2_p = jnp.pad(w2, ((0, H_p - H), (0, C_out_p - C_out))).astype(jnp.bfloat16)
        b1_p = jnp.pad(b1.reshape(1, -1), ((0, 0), (0, H_p - H))).astype(jnp.float32)
        b2_p = jnp.pad(b2.reshape(1, -1), ((0, 0), (0, C_out_p - C_out))).astype(jnp.float32)
        return x2, w1_p, b1_p, w2_p, b2_p

    if use_resident:
        tm, M_p, H_p = tm_res, M_p_res, H_p_res
        x2, w1_p, b1_p, w2_p, b2_p = _pad_inputs(M_p, H_p)
        n_row_tiles = M_p // tm

        vmem_bytes = _resident_vmem_bytes(tm, C_in_p, H_p, C_out_p, out_itemsize)
        vmem_limit = int(min(vmem_bytes + _VMEM_SLACK, budget))

        cost = pl.CostEstimate(
            flops=2 * M_p * (C_in_p * H_p + H_p * C_out_p),
            transcendentals=M_p * H_p,  # erf in GELU
            bytes_accessed=(M_p * C_in_p * 2                # x: one pass
                            + C_in_p * H_p * 2 + H_p * 4    # W1/b1: one pass
                            + H_p * C_out_p * 2 + C_out_p * 4
                            + M_p * C_out_p * out_itemsize),
        )

        out2 = pl.pallas_call(
            mlp_resident_kernel,
            out_shape=jax.ShapeDtypeStruct((M_p, C_out_p), orig_dtype),
            grid_spec=pltpu.PrefetchScalarGridSpec(
                num_scalar_prefetch=0,
                grid=(n_row_tiles,),
                in_specs=[
                    pl.BlockSpec((tm, C_in_p), lambda i: (i, 0)),      # x rows
                    pl.BlockSpec((C_in_p, H_p), lambda i: (0, 0)),     # W1 (resident)
                    pl.BlockSpec((1, H_p), lambda i: (0, 0)),          # b1 (resident)
                    pl.BlockSpec((H_p, C_out_p), lambda i: (0, 0)),    # W2 (resident)
                    pl.BlockSpec((1, C_out_p), lambda i: (0, 0)),      # b2 (resident)
                ],
                out_specs=pl.BlockSpec((tm, C_out_p), lambda i: (i, 0)),
            ),
            compiler_params=pltpu.CompilerParams(
                dimension_semantics=("parallel",),
                vmem_limit_bytes=vmem_limit,
            ),
            cost_estimate=cost,
        )(x2, w1_p, b1_p, w2_p, b2_p)

    else:
        # Streaming fallback: big row tiles amortize weight re-streaming and
        # per-step overhead; 256-granular hidden tiles for the 2x256x256 MXU.
        tm, M_p = _pick_tm(M, tile_m if tile_m is not None else 1024)
        th_req = tile_h if tile_h is not None else 1024
        th = _round_up(min(th_req, _round_up(H, 256)), 256)
        H_p = _round_up(H, th)
        x2, w1_p, b1_p, w2_p, b2_p = _pad_inputs(M_p, H_p)

        n_row_tiles = M_p // tm
        grid = (n_row_tiles, H_p // th)

        vmem_bytes = _streaming_vmem_bytes(tm, th, C_in_p, C_out_p, out_itemsize)
        vmem_limit = int(min(vmem_bytes + _VMEM_SLACK, budget))

        cost = pl.CostEstimate(
            flops=2 * M_p * (C_in_p * H_p + H_p * C_out_p),
            transcendentals=M_p * H_p,
            # W1/b1/W2 are re-streamed once per row tile (index_map depends on hk).
            bytes_accessed=(M_p * C_in_p * 2
                            + n_row_tiles * (C_in_p * H_p * 2 + H_p * 4
                                             + H_p * C_out_p * 2)
                            + C_out_p * 4
                            + M_p * C_out_p * out_itemsize),
        )

        out2 = pl.pallas_call(
            mlp_streaming_kernel,
            out_shape=jax.ShapeDtypeStruct((M_p, C_out_p), orig_dtype),
            grid_spec=pltpu.PrefetchScalarGridSpec(
                num_scalar_prefetch=0,
                grid=grid,
                in_specs=[
                    pl.BlockSpec((tm, C_in_p), lambda i, hk: (i, 0)),     # x rows
                    pl.BlockSpec((C_in_p, th), lambda i, hk: (0, hk)),    # W1 H-tile
                    pl.BlockSpec((1, th), lambda i, hk: (0, hk)),         # b1 H-tile
                    pl.BlockSpec((th, C_out_p), lambda i, hk: (hk, 0)),   # W2 H-tile
                    pl.BlockSpec((1, C_out_p), lambda i, hk: (0, 0)),     # b2
                ],
                out_specs=pl.BlockSpec((tm, C_out_p), lambda i, hk: (i, 0)),
                scratch_shapes=[pltpu.VMEM((tm, C_out_p), jnp.float32)],
            ),
            compiler_params=pltpu.CompilerParams(
                dimension_semantics=("parallel", "arbitrary"),
                vmem_limit_bytes=vmem_limit,
            ),
            cost_estimate=cost,
        )(x2, w1_p, b1_p, w2_p, b2_p)

    return out2[:M, :C_out].reshape(B, N, C_out)


def init_mlp_params(key, in_features, hidden_features, out_features, dtype=jnp.float32):
    k1, k2, k3, k4 = jax.random.split(key, 4)
    # Shapes match nn.Linear acting on last dim (weight stored transposed: (in, out)).
    w1 = jax.random.normal(k1, (in_features, hidden_features), dtype) * 0.02
    b1 = jax.random.normal(k2, (1, hidden_features), dtype) * 0.02
    w2 = jax.random.normal(k3, (hidden_features, out_features), dtype) * 0.02
    b2 = jax.random.normal(k4, (1, out_features), dtype) * 0.02
    return w1, b1, w2, b2


def mlp_ref(x, w1, b1, w2, b2):
    """Reference matching the kernel's precision (bf16 MXU operands, f32 accum)."""
    B, N, C_in = x.shape
    hp = jax.lax.Precision.HIGHEST
    x2 = x.reshape(B * N, C_in).astype(jnp.bfloat16).astype(jnp.float32)
    w1b = w1.astype(jnp.bfloat16).astype(jnp.float32)
    w2b = w2.astype(jnp.bfloat16).astype(jnp.float32)
    h = jnp.dot(x2, w1b, precision=hp) + b1.reshape(1, -1)
    h = _gelu_exact(h)
    h = h.astype(jnp.bfloat16).astype(jnp.float32)
    y = jnp.dot(h, w2b, precision=hp) + b2.reshape(1, -1)
    return y.reshape(B, N, -1).astype(x.dtype)


if __name__ == "__main__":
    key = jax.random.PRNGKey(0)

    # Case 1: lane-aligned shapes, resident-weight path, multi-step row grid.
    k1, k2, key = jax.random.split(key, 3)
    B, N, C_in, H, C_out = 2, 128, 128, 256, 128
    x = jax.random.normal(k1, (B, N, C_in), jnp.float32)
    w1, b1, w2, b2 = init_mlp_params(k2, C_in, H, C_out)
    out = jax.block_until_ready(mlp_pallas(x, w1, b1, w2, b2, tile_m=128))
    ref = mlp_ref(x, w1, b1, w2, b2)
    assert out.shape == (B, N, C_out)
    assert jnp.allclose(out, ref, atol=2e-4, rtol=2e-3), float(jnp.max(jnp.abs(out - ref)))

    # Case 2: odd / small shapes exercising the zero-padding path (resident).
    k1, k2, key = jax.random.split(key, 3)
    B, N, C_in, H, C_out = 2, 10, 32, 48, 40
    x = jax.random.normal(k1, (B, N, C_in), jnp.float32)
    w1, b1, w2, b2 = init_mlp_params(k2, C_in, H, C_out)
    out = jax.block_until_ready(mlp_pallas(x, w1, b1, w2, b2))
    ref = mlp_ref(x, w1, b1, w2, b2)
    assert out.shape == (B, N, C_out)
    assert jnp.allclose(out, ref, atol=2e-4, rtol=2e-3), float(jnp.max(jnp.abs(out - ref)))

    # Case 3: force the streaming (hidden-tiled) path: 2 row tiles x 2 H tiles.
    k1, k2, key = jax.random.split(key, 3)
    B, N, C_in, H, C_out = 2, 64, 128, 512, 128
    x = jax.random.normal(k1, (B, N, C_in), jnp.float32)
    w1, b1, w2, b2 = init_mlp_params(k2, C_in, H, C_out)
    out = jax.block_until_ready(
        mlp_pallas(x, w1, b1, w2, b2, tile_m=64, tile_h=256, force_streaming=True))
    ref = mlp_ref(x, w1, b1, w2, b2)
    assert out.shape == (B, N, C_out)
    assert jnp.allclose(out, ref, atol=2e-4, rtol=2e-3), float(jnp.max(jnp.abs(out - ref)))

    print("KERNEL_OK")
</pallas_src>

<mosaic_0001>
module attributes {stable_mosaic.version = 11 : i64} {
  func.func @mlp_resident_kernel(%arg0: i32, %arg1: memref<128x128xbf16, #tpu.memory_space<vmem>>, %arg2: memref<128x256xbf16, #tpu.memory_space<vmem>>, %arg3: memref<1x256xf32, #tpu.memory_space<vmem>>, %arg4: memref<256x128xbf16, #tpu.memory_space<vmem>>, %arg5: memref<1x128xf32, #tpu.memory_space<vmem>>, %arg6: memref<128x128xf32, #tpu.memory_space<vmem>>) attributes {dimension_semantics = [#tpu.dimension_semantics<parallel>], iteration_bounds = array<i64: 2>, scalar_prefetch = 0 : i64, scratch_operands = 0 : i64, tpu.core_type = #tpu.core_type<tc>, window_params = [{transform_indices = @transform_0, window_bounds = array<i64: 128, 128>}, {pipeline_mode = #tpu.pipeline_mode<synchronous>, transform_indices = @transform_1, window_bounds = array<i64: 128, 256>}, {pipeline_mode = #tpu.pipeline_mode<synchronous>, transform_indices = @transform_2, window_bounds = array<i64: 1, 256>}, {pipeline_mode = #tpu.pipeline_mode<synchronous>, transform_indices = @transform_3, window_bounds = array<i64: 256, 128>}, {pipeline_mode = #tpu.pipeline_mode<synchronous>, transform_indices = @transform_4, window_bounds = array<i64: 1, 128>}, {transform_indices = @transform_5, window_bounds = array<i64: 128, 128>}]} {
    %c0 = arith.constant 0 : index
    %c0_0 = arith.constant 0 : index
    %0 = vector.load %arg1[%c0, %c0_0] : memref<128x128xbf16, #tpu.memory_space<vmem>>, vector<128x128xbf16>
    %c0_1 = arith.constant 0 : index
    %c0_2 = arith.constant 0 : index
    %1 = vector.load %arg2[%c0_1, %c0_2] : memref<128x256xbf16, #tpu.memory_space<vmem>>, vector<128x256xbf16>
    %cst = arith.constant dense<0.000000e+00> : vector<128x256xf32>
    %2 = tpu.matmul %0, %1, %cst {dimension_numbers = #tpu.dot_dimension_numbers<[1], [0], [0], [1], [0, 0, 1, 1], [], []>} : vector<128x128xbf16>, vector<128x256xbf16>, vector<128x256xf32> -> vector<128x256xf32>
    %c0_3 = arith.constant 0 : index
    %c0_4 = arith.constant 0 : index
    %3 = vector.load %arg3[%c0_3, %c0_4] : memref<1x256xf32, #tpu.memory_space<vmem>>, vector<1x256xf32>
    %4 = vector.broadcast %3 : vector<1x256xf32> to vector<128x256xf32>
    %5 = arith.addf %2, %4 : vector<128x256xf32>
    %cst_5 = arith.constant 5.000000e-01 : f32
    %6 = vector.broadcast %cst_5 : f32 to vector<128x256xf32>
    %7 = arith.mulf %6, %5 : vector<128x256xf32>
    %cst_6 = arith.constant 0.707106769 : f32
    %8 = vector.broadcast %cst_6 : f32 to vector<128x256xf32>
    %9 = arith.mulf %5, %8 : vector<128x256xf32>
    %10 = math.erf %9 : vector<128x256xf32>
    %cst_7 = arith.constant 1.000000e+00 : f32
    %11 = vector.broadcast %cst_7 : f32 to vector<128x256xf32>
    %12 = arith.addf %11, %10 : vector<128x256xf32>
    %13 = arith.mulf %7, %12 : vector<128x256xf32>
    %14 = arith.truncf %13 : vector<128x256xf32> to vector<128x256xbf16>
    %c0_8 = arith.constant 0 : index
    %c0_9 = arith.constant 0 : index
    %15 = vector.load %arg4[%c0_8, %c0_9] : memref<256x128xbf16, #tpu.memory_space<vmem>>, vector<256x128xbf16>
    %cst_10 = arith.constant dense<0.000000e+00> : vector<128x128xf32>
    %16 = tpu.matmul %14, %15, %cst_10 {dimension_numbers = #tpu.dot_dimension_numbers<[1], [0], [0], [1], [0, 0, 1, 1], [], []>} : vector<128x256xbf16>, vector<256x128xbf16>, vector<128x128xf32> -> vector<128x128xf32>
    %c0_11 = arith.constant 0 : index
    %c0_12 = arith.constant 0 : index
    %17 = vector.load %arg5[%c0_11, %c0_12] : memref<1x128xf32, #tpu.memory_space<vmem>>, vector<1x128xf32>
    %18 = vector.broadcast %17 : vector<1x128xf32> to vector<128x128xf32>
    %19 = arith.addf %16, %18 : vector<128x128xf32>
    %c0_13 = arith.constant 0 : index
    %c0_14 = arith.constant 0 : index
    %20 = vector.load %arg6[%c0_13, %c0_14] : memref<128x128xf32, #tpu.memory_space<vmem>>, vector<128x128xf32>
    tpu.vector_store %arg6[%c0_13, %c0_14], %19 {strides = array<i32>} : memref<128x128xf32, #tpu.memory_space<vmem>>, vector<128x128xf32>,
    return
  }
  func.func @transform_0(%arg0: i32) -> (i32, i32) {
    %c0_i32 = arith.constant 0 : i32
    %c0_i32_0 = arith.constant 0 : i32
    return %arg0, %c0_i32 : i32, i32
  }
  func.func @transform_1(%arg0: i32) -> (i32, i32) {
    %c0_i32 = arith.constant 0 : i32
    %c0_i32_0 = arith.constant 0 : i32
    %c0_i32_1 = arith.constant 0 : i32
    return %c0_i32, %c0_i32_0 : i32, i32
  }
  func.func @transform_2(%arg0: i32) -> (i32, i32) {
    %c0_i32 = arith.constant 0 : i32
    %c0_i32_0 = arith.constant 0 : i32
    %c0_i32_1 = arith.constant 0 : i32
    return %c0_i32, %c0_i32_0 : i32, i32
  }
  func.func @transform_3(%arg0: i32) -> (i32, i32) {
    %c0_i32 = arith.constant 0 : i32
    %c0_i32_0 = arith.constant 0 : i32
    %c0_i32_1 = arith.constant 0 : i32
    return %c0_i32, %c0_i32_0 : i32, i32
  }
  func.func @transform_4(%arg0: i32) -> (i32, i32) {
    %c0_i32 = arith.constant 0 : i32
    %c0_i32_0 = arith.constant 0 : i32
    %c0_i32_1 = arith.constant 0 : i32
    return %c0_i32, %c0_i32_0 : i32, i32
  }
  func.func @transform_5(%arg0: i32) -> (i32, i32) {
    %c0_i32 = arith.constant 0 : i32
    %c0_i32_0 = arith.constant 0 : i32
    return %arg0, %c0_i32 : i32, i32
  }
}

</mosaic_0001>

<bundles_post_ra>
// kernel: tpu_custom_call.1
= control target key start
LH: loop header
LB: loop body
LE: loop exit
PB: predicated region body
PF: predicated region fallthrough
CT: control target
= control target key end

     0   :  { %10 = vsyncpa [#allocation3], 0  ;;  %s1986_s0 = inlined_call_operand.hbm [shape: bf16[256,128], index: 0, kind: input, shape index: {}]   ;;  %s1987_s1 = inlined_call_operand.hbm [shape: bf16[128,256], index: 1, kind: input, shape index: {}]   ;;  %s1988_s2 = inlined_call_operand.vmem [shape: f32[1,256], index: 2, kind: input, shape index: {}]   ;;  %s1989_s3 = inlined_call_operand.hbm [shape: bf16[256,128], index: 3, kind: input, shape index: {}]   ;;  %s1990_s4 = inlined_call_operand.vmem [shape: f32[1,128], index: 4, kind: input, shape index: {}]   ;;  %s1991_s5 = inlined_call_operand.hbm [shape: f32[256,128], index: 5, kind: output, shape index: {}]  }
   0x1   :  { %12 = vsyncpa [#allocation3 + $0x1], 0 }
   0x2   :  { %13 = vsyncpa [#allocation6], 0 }
   0x3   :  { %14 = vsyncpa [#allocation4], 0 }
   0x4   :  { %16 = vsyncpa [#allocation4 + $0x1], 0  ;;  %s1600_s18 = smov 0   ;;  %s1602_s19 = smov 0  }
   0x5   :  { %s1604_s20 = smov 0   ;;  %s1606_s21 = smov 0  }
   0x6 LB: > { %s1621_s22 = sadd.s32 4294967295, %s1557_s21   ;;  %s1090_s23 = sadd.s32 4294967294, %s1557_s21   ;;  %s1557_s21 = sphi %s1606_s21, %s2011_s21   ;;  %s1553_s20 = sphi %s1604_s20, %s2010_s20   ;;  %s1549_s19 = sphi %s1602_s19, %s2009_s19   ;;  %s1545_s18 = sphi %s1600_s18, %s2008_s18  }
   0x7   : > { %p42_p0 = scmp.ne.s32.totalorder %s1549_s19, %s1545_s18  ;;  %p1992_p1 = scmp.eq.s32.totalorder %s1621_s22, 0 }
   0x8   : > { %p156_p3 = scmp.eq.s32.totalorder %s1090_s23, 1  ;;  %p1091_p5 = scmp.ge.s32.totalorder %s1557_s21, 1 }
   0x9   : > { %p1630_p4 = por %p1992_p1, %p42_p0  ;;  %p163_p7 = scmp.lt.s32.totalorder %s1557_s21, 3 }
   0xa   : > { %p1635_p6 = por %p156_p3, %p42_p0  ;;  %s1559_s27 = smov [#allocation5]  }
   0xb   : > { %s1995_s24 = scalar_select %p1630_p4, 1, 0 }
   0xc   : > { %s1996_s25 = scalar_select %p1635_p6, 1, 0 }
   0xd   : > { %p1640_p8 = pnand %p1091_p5, %p163_p7  ;;  %s175_s28 = sshll.u32 %s1559_s27, 4  ;;  %s1644_s28 = int_to_ptr.vmem [resolvable:$true] %s175_s28 }
   0xe   : > { %s1560_s30 = smov [#allocation7]   ;;  %s1401_s9 = scalar_lea.hbm %s1987_s1, 2048 }
   0xf   : > { %p1227_p9 = pneg %p1640_p8  ;;  %s191_s6 = sshll.u32 %s1560_s30, 4  ;;  %s1655_s6 = int_to_ptr.vmem [resolvable:$true] %s191_s6 }
  0x10   : > { %p1402_p12 = scmp.ne.s32.totalorder %s1987_s1, %s1401_s9  ;;  %p1408_p5 = scmp.lt.u32.totalorder %s1401_s9, %s1987_s1 }
  0x11   : > { %p1651_p11 = pnand %p1227_p9, %p1992_p1 }
  0x13   : > { %p1403_p13 = pneg %p1651_p11 }
  0x15   : > { %p1404_p0 = pnand %p1403_p13, %p1402_p12 }
  0x17   : > { %p1405_p3 = pneg %p1404_p0 }
  0x19   : > { %p1410_p7 = pnand %p1408_p5, %p1405_p3 }
  0x1b   : > { %1413 = shalt.err (!%p1410_p7)
}
  0x1c   : > { %s1414_s14 = scalar_lea.vmem %s1644_s28, 2048  ;;  %p1422_p2 = scmp.lt.s32.totalorder %s1644_s28, %s1644_s28 }
  0x1d   : > { %p1415_p9 = scmp.ne.s32.totalorder %s1644_s28, %s1414_s14  ;;  %p1423_p12 = scmp.lt.s32.totalorder %s1414_s14, %s1414_s14 }
  0x1f   : > { %p1417_p10 = pnand %p1415_p9, %p1403_p13  ;;  %p1424_p0 = por %p1423_p12, %p1422_p2 }
  0x21   : > { %p1418_p1 = pneg %p1417_p10 }
  0x23   : > { %p1425_p6 = pnand %p1424_p0, %p1418_p1 }
  0x25   : > { %1428 = shalt.err (!%p1425_p6)
}
  0x26   : > { %s1561_s15 = smov 128   ;;  %s1562_s16 = smov 8  }
  0x27   : > { %1230 = dma.hbm_to_vmem [thread:$0]  (!%p1651_p11), %s1987_s1, 2048, %s1644_s28, [#allocation6], %s1561_s15, %s1561_s15, %s1562_s16  }
  0x28   : > { %s1429_s7 = scalar_lea.hbm %s1989_s3, 2048 }
  0x29   : > { %p1430_p2 = scmp.ne.s32.totalorder %s1989_s3, %s1429_s7  ;;  %p1436_p10 = scmp.lt.u32.totalorder %s1429_s7, %s1989_s3 }
  0x2b   : > { %p1432_p1 = pnand %p1430_p2, %p1403_p13 }
  0x2d   : > { %p1433_p6 = pneg %p1432_p1 }
  0x2f   : > { %p1438_p3 = pnand %p1436_p10, %p1433_p6 }
  0x31   : > { %1441 = shalt.err (!%p1438_p3)
}
  0x32   : > { %s1442_s28 = scalar_lea.vmem %s1655_s6, 2048  ;;  %p1450_p12 = scmp.lt.s32.totalorder %s1655_s6, %s1655_s6 }
  0x33   : > { %p1443_p5 = scmp.ne.s32.totalorder %s1655_s6, %s1442_s28  ;;  %p1451_p0 = scmp.lt.s32.totalorder %s1442_s28, %s1442_s28 }
  0x35   : > { %p1445_p7 = pnand %p1443_p5, %p1403_p13  ;;  %p1452_p2 = por %p1451_p0, %p1450_p12 }
  0x37   : > { %p1446_p9 = pneg %p1445_p7 }
  0x39   : > { %p1453_p1 = pnand %p1452_p2, %p1446_p9 }
  0x3b   : > { %1456 = shalt.err (!%p1453_p1)
}
  0x3c   : > { %s1563_s12 = smov 64   ;;  %s1564_s13 = smov 4  }
  0x3d   : > { %1233 = dma.hbm_to_vmem [thread:$0]  (!%p1651_p11), %s1989_s3, 2048, %s1655_s6, [#allocation6], %s1563_s12, %s1563_s12, %s1564_s13  }
  0x3e   : > { %s1713_s16 = sadd.s32 1, %s1557_s21   ;;  %s29_s23 = sadd.s32 1, %s1553_s20 }
  0x3f   : > { %s26_s17 = ssub.s32 %s1557_s21, %s1713_s16  ;;  %p36_p6 = scmp.ne.s32.totalorder %s1553_s20, %s1549_s19 }
  0x40   : > { %p27_p13 = scmp.eq.s32.totalorder %s26_s17, 0  ;;  %p37_p10 = scmp.eq.s32.totalorder %s1557_s21, 0 }
  0x41   : > { %p1999_p5 = scmp.eq.s32.totalorder %s1621_s22, 1  ;;  %p1244_p9 = scmp.lt.s32.totalorder %s1557_s21, 2 }
  0x42   : > { %s1722_s27 = scalar_select %p27_p13, %s1553_s20, %s29_s23  }
  0x43   : > { %p38_p3 = por %p37_p10, %p36_p6  ;;  %p1726_p7 = por %p1999_p5, %p36_p6 }
  0x44   : > { %s208_s30 = sand.u32 1, %s1553_s20   ;;  %s1149_s6 = sshll.u32 %s1557_s21, 10 }
  0x45   : > { %s2000_s29 = scalar_select %p1726_p7, 1, 0 }
  0x46   : > { %s1095_s7 = sshll.u32 %s208_s30, 6  ;;  %s1736_s10 = scalar_lea.hbm %s1986_s0, %s1149_s6 }
  0x47   : > { %s212_s11 = scalar_lea.vmem [#allocation2], %s1095_s7  ;;  %p1740_p11 = pnand %p1244_p9, %p38_p3 }
  0x48   : > { %s219_s28 = sshll.u32 %s212_s11, 4  ;;  %s1744_s15 = scalar_lea.sflag [#allocation3], %s208_s30  ;;  %s1738_s28 = int_to_ptr.vmem [resolvable:$true] %s219_s28 }
  0x49   : > { %s1457_s17 = scalar_lea.hbm %s1736_s10, 1024  ;;  %p1459_p0 = pneg %p1740_p11 }
  0x4a   : > { %p1458_p12 = scmp.ne.s32.totalorder %s1736_s10, %s1457_s17  ;;  %s1462_s6 = scalar_lea.hbm %s1986_s0, 2048 }
  0x4b   : > { %p1463_p13 = scmp.lt.u32.totalorder %s1736_s10, %s1986_s0  ;;  %p1464_p6 = scmp.lt.u32.totalorder %s1462_s6, %s1457_s17 }
  0x4c   : > { %p1460_p2 = pnand %p1459_p0, %p1458_p12  ;;  %p1466_p3 = scmp.lt.u32.totalorder %s1457_s17, %s1736_s10 }
  0x4d   : > { %p1465_p10 = por %p1464_p6, %p1463_p13 }
  0x4e   : > { %p1461_p1 = pneg %p1460_p2 }
  0x4f   : > { %p1467_p5 = por %p1466_p3, %p1465_p10 }
  0x51   : > { %p1468_p9 = pnand %p1467_p5, %p1461_p1 }
  0x53   : > { %1471 = shalt.err (!%p1468_p9)
}
  0x54   : > { %s1472_s30 = scalar_lea.vmem %s1738_s28, 1024  ;;  %s1565_s11 = smov [#allocation2]  }
  0x55   : > { %p1473_p12 = scmp.ne.s32.totalorder %s1738_s28, %s1472_s30  ;;  %s1477_s23 = sshll.u32 %s1565_s11, 4  ;;  %s1478_s23 = int_to_ptr.vmem [resolvable:$false] %s1477_s23 }
  0x56   : > { %s1479_s7 = scalar_lea.vmem %s1478_s23, 2048  ;;  %p1480_p4 = scmp.lt.s32.totalorder %s1738_s28, %s1478_s23 }
  0x57   : > { %p1475_p2 = pnand %p1473_p12, %p1459_p0  ;;  %p1481_p13 = scmp.lt.s32.totalorder %s1479_s7, %s1472_s30 }
  0x59   : > { %p1476_p7 = pneg %p1475_p2  ;;  %p1482_p6 = por %p1481_p13, %p1480_p4 }
  0x5b   : > { %p1483_p10 = pnand %p1482_p6, %p1476_p7 }
  0x5d   : > { %1486 = shalt.err (!%p1483_p10)
}
  0x5e   : > { %1237 = dma.hbm_to_vmem [thread:$0]  (!%p1740_p11), %s1736_s10, 1024, %s1738_s28, %s1744_s15, %s1563_s12, %s1563_s12, %s1564_s13  }
  0x5f   : > { %231 = sbr.rel (%p1640_p8) target bundleno = 666 (0x29a), region = 40  ;;  %s1778_s17 = sand.u32 (!%p1640_p8), 1, %s1549_s19  }
  0x60   : > { %s1099_s6 = sshll.u32 (!%p1640_p8), %s1778_s17, 6  ;;  %s234_s8 = scalar_lea.sflag (!%p1640_p8), [#allocation3], %s1778_s17 }
  0x61   : > { %s1782_s9 = scalar_lea.vmem (!%p1640_p8), [#allocation2], %s1099_s6  ;;  %p2002_p4 = scmp.ne.s32.totalorder (!%p1640_p8), %s1995_s24, 0 }
  0x66   : > { %1532 = dma.done.wait (%p2002_p4), %s234_s8, 1024  }
  0x67   : > { %1534 = vsyncadd (%p2002_p4), %s234_s8, 4294966272  ;;  %p2003_p7 = scmp.eq.s32.totalorder %s1621_s22, 0 }
  0x69   : > { %1536 = dma.done.wait (%p2003_p7), [#allocation6], 4096   ;;  %p2004_p8 = pmov %p2003_p7 }
  0x6a   : > { %v1566_v0 = vmov 0   ;;  %v1289_v1 = vld [vmem:[#allocation5 + $0x4] ss:$8 sps:$4 sm:$0xff]   ;;  %v1291_v2 = vld [vmem:[#allocation5] ss:$8 sps:$4 sm:$0xff]   ;;  %v1315_v23 = vld [vmem:[%s1782_s9 + $0x10] sm:$0xff]   ;;  %v309_v41 = vlaneseq }
  0x6b   : > { %1538 = vsyncadd (%p2004_p8), [#allocation6], 4294963200  ;;  %479 = vmatprep.mubr.bf16.mxu0 %v1566_v0  ;;  %447 = vmatprep.subr.bf16.mxu0 %v1289_v1  ;;  %v1292_v3 = vld [vmem:[#allocation5 + $0x14] ss:$8 sps:$4 sm:$0xff]   ;;  %v1294_v4 = vld [vmem:[#allocation5 + $0x10] ss:$8 sps:$4 sm:$0xff]  }
  0x6c   : > { %448 = vmatpush1.bf16.msra.mxu0 %v1291_v2  ;;  %v1295_v5 = vld [vmem:[#allocation5 + $0x24] ss:$8 sps:$4 sm:$0xff]   ;;  %v1297_v6 = vld [vmem:[#allocation5 + $0x20] ss:$8 sps:$4 sm:$0xff]   ;;  %v1298_v7 = vld [vmem:[#allocation5 + $0x34] ss:$8 sps:$4 sm:$0xff]  }
  0x6d   : > { %449 = vmatprep.subr.bf16.mxu0 %v1292_v3  ;;  %v1300_v8 = vld [vmem:[#allocation5 + $0x30] ss:$8 sps:$4 sm:$0xff]   ;;  %v1301_v9 = vld [vmem:[#allocation5 + $0x44] ss:$8 sps:$4 sm:$0xff]   ;;  %v1303_v10 = vld [vmem:[#allocation5 + $0x40] ss:$8 sps:$4 sm:$0xff]  }
  0x6e   : > { %v1304_v11 = vld [vmem:[#allocation5 + $0x54] ss:$8 sps:$4 sm:$0xff]   ;;  %v1306_v12 = vld [vmem:[#allocation5 + $0x50] ss:$8 sps:$4 sm:$0xff]   ;;  %v1307_v13 = vld [vmem:[#allocation5 + $0x64] ss:$8 sps:$4 sm:$0xff]  }
  0x6f   : > { %v1321_v14 = vld [vmem:[#allocation7 + $0x40] sm:$0xff]   ;;  %v1323_v17 = vld [vmem:[#allocation7 + $0x48] sm:$0xff]   ;;  %v1310_v18 = vld [vmem:[#allocation5 + $0x74] ss:$8 sps:$4 sm:$0xff]   ;;  %v310_v42 = vshrl.u32 %v309_v41, 7  ;;  %s1102_s12 = sshll.u32 %s1778_s17, 7 }
  0x70   : > { %450 = vmatpush1.bf16.msra.mxu0 %v1294_v4  ;;  %v1322_v15 = vld [vmem:[#allocation7] sm:$0xff]   ;;  %1151 = vmatprep.subr.bf16.mxu1 %v1321_v14  ;;  %v1324_v19 = vld [vmem:[#allocation7 + $0x8] sm:$0xff]   ;;  %v1312_v20 = vld [vmem:[#allocation5 + $0x70] ss:$8 sps:$4 sm:$0xff]   ;;  %s1902_s28 = scalar_lea.vmem [#allocation8], %s1102_s12  ;;  %s1150_s14 = sshll.u32 %s1621_s22, 11 }
  0x71   : > { %451 = vmatprep.subr.bf16.mxu0 %v1295_v5  ;;  %v1309_v16 = vld [vmem:[#allocation5 + $0x60] ss:$8 sps:$4 sm:$0xff]   ;;  %1152 = vmatpush3.bf16.msra.mxu1 %v1322_v15  ;;  %v1316_v24 = vld [vmem:[%s1782_s9 + $0x18] sm:$0xff]   ;;  %v1319_v27 = vld [vmem:[%s1782_s9 + $0x30] sm:$0xff]   ;;  %v311_v43 = vsub.s32 0, %v310_v42  ;;  %v315_v45 = vsub.s32 1, %v310_v42  ;;  %s1937_s23 = scalar_lea.hbm %s1991_s5, %s1150_s14 }
  0x72   : > { %1153 = vmatprep.subr.bf16.mxu1 %v1323_v17  ;;  %v1313_v21 = vld [vmem:[%s1782_s9] sm:$0xff]   ;;  %v1314_v22 = vld [vmem:[%s1782_s9 + $0x8] sm:$0xff]   ;;  %v1320_v28 = vld [vmem:[%s1782_s9 + $0x38] sm:$0xff]   ;;  %s998_s15 = sshll.u32 %s1902_s28, 4  ;;  %s985_s22 = scalar_lea.sflag [#allocation4], %s1778_s17  ;;  %s1939_s15 = int_to_ptr.vmem [resolvable:$true] %s998_s15 }
  0x73   : > { %v1317_v25 = vld [vmem:[%s1782_s9 + $0x20] sm:$0xff]   ;;  %v1318_v26 = vld [vmem:[%s1782_s9 + $0x28] sm:$0xff]   ;;  %v1325_v29 = vld [vmem:[#allocation7 + $0x50] sm:$0xff]   ;;  %s1487_s7 = scalar_lea.vmem %s1939_s15, 2048  ;;  %p2005_p0 = scmp.ne.s32.totalorder %s2000_s29, 0 }
  0x74   : > { %452 = vmatpush1.bf16.msra.mxu0 %v1297_v6  ;;  %v1326_v30 = vld [vmem:[#allocation7 + $0x10] sm:$0xff]   ;;  %v1327_v31 = vld [vmem:[#allocation7 + $0x58] sm:$0xff]   ;;  %v1329_v33 = vld [vmem:[#allocation7 + $0x60] sm:$0xff]   ;;  %p1488_p11 = scmp.ne.s32.totalorder %s1939_s15, %s1487_s7  ;;  %s1567_s6 = smov [#allocation8]  }
  0x75   : > { %453 = vmatprep.subr.bf16.mxu0 %v1298_v7  ;;  %1154 = vmatpush3.bf16.msra.mxu1 %v1324_v19  ;;  %v1328_v32 = vld [vmem:[#allocation7 + $0x18] sm:$0xff]   ;;  %v1330_v34 = vld [vmem:[#allocation7 + $0x20] sm:$0xff]   ;;  %v1331_v35 = vld [vmem:[#allocation7 + $0x68] sm:$0xff]   ;;  %s1491_s8 = sshll.u32 %s1567_s6, 4  ;;  %s1492_s8 = int_to_ptr.vmem [resolvable:$false] %s1491_s8 }
  0x76   : > { %1155 = vmatprep.subr.bf16.mxu1 %v1325_v29  ;;  %v1332_v36 = vld [vmem:[#allocation7 + $0x28] sm:$0xff]   ;;  %v1333_v37 = vld [vmem:[#allocation7 + $0x70] sm:$0xff]   ;;  %v1335_v39 = vld [vmem:[#allocation7 + $0x78] sm:$0xff]   ;;  %p1489_p1 = pnand %p1488_p11, %p2005_p0  ;;  %s1493_s9 = scalar_lea.vmem %s1492_s8, 4096 }
  0x77   : > { %v1334_v38 = vld [vmem:[#allocation7 + $0x30] sm:$0xff]   ;;  %v1336_v40 = vld [vmem:[#allocation7 + $0x38] sm:$0xff]   ;;  %v307_v44 = vld [vmem:[%s1988_s2] sm:$0x3]  ;;  %p1494_p5 = scmp.lt.s32.totalorder %s1939_s15, %s1492_s8  ;;  %p1495_p9 = scmp.lt.s32.totalorder %s1493_s9, %s1487_s7 }
  0x78   : > { %454 = vmatpush1.bf16.msra.mxu0 %v1300_v8  ;;  %v1803_v46 = vrot.slane %v307_v44, %v311_v43  ;;  %v1805_v47 = vrot.slane %v307_v44, %v315_v45  ;;  %p1490_p3 = pneg %p1489_p1 }
  0x79   : > { %455 = vmatprep.subr.bf16.mxu0 %v1301_v9  ;;  %1156 = vmatpush3.bf16.msra.mxu1 %v1326_v30  ;;  %p1496_p12 = por %p1495_p9, %p1494_p5 }
  0x7a   : > { %1157 = vmatprep.subr.bf16.mxu1 %v1327_v31 }
  0x7b   : > { %p1497_p2 = pnand %p1496_p12, %p1490_p3 }
  0x7c   : > { %456 = vmatpush1.bf16.msra.mxu0 %v1303_v10 }
  0x7d   : > { %457 = vmatprep.subr.bf16.mxu0 %v1304_v11  ;;  %1158 = vmatpush3.bf16.msra.mxu1 %v1328_v32 }
  0x7e   : > { %1159 = vmatprep.subr.bf16.mxu1 %v1329_v33 }
  0x80   : > { %458 = vmatpush1.bf16.msra.mxu0 %v1306_v12 }
  0x81   : > { %459 = vmatprep.subr.bf16.mxu0 %v1307_v13  ;;  %1160 = vmatpush3.bf16.msra.mxu1 %v1330_v34 }
  0x82   : > { %1161 = vmatprep.subr.bf16.mxu1 %v1331_v35 }
  0x84   : > { %460 = vmatpush1.bf16.msra.mxu0 %v1309_v16 }
  0x85   : > { %461 = vmatprep.subr.bf16.mxu0 %v1310_v18  ;;  %1162 = vmatpush3.bf16.msra.mxu1 %v1332_v36 }
  0x86   : > { %1163 = vmatprep.subr.bf16.mxu1 %v1333_v37 }
  0x88   : > { %462 = vmatpush1.bf16.msra.mxu0 %v1312_v20 }
  0x89   : > { %1164 = vmatpush3.bf16.msra.mxu1 %v1334_v38 }
  0x8a   : > { %1165 = vmatprep.subr.bf16.mxu1 %v1335_v39 }
  0x8b   : > { %480 = vmatmul.mubr.bf16.vlgmr.msra.gmra.mrb[0].mxu0 %v1313_v21 }
  0x8c   : > { %489 = vmatprep.mubr.bf16.mxu0 %v1566_v0 }
  0x8d   : > { %1166 = vmatpush3.bf16.msra.mxu1 %v1336_v40 }
  0x93   : > { %490 = vmatmul.mubr.bf16.gmra.mrb[4].mxu0 %v1314_v22 }
  0x94   : > { %499 = vmatprep.mubr.bf16.mxu0 %v1566_v0 }
  0x9b   : > { %500 = vmatmul.mubr.bf16.gmra.mrb[8].mxu0 %v1315_v23 }
  0x9c   : > { %509 = vmatprep.mubr.bf16.mxu0 %v1566_v0 }
  0xa3   : > { %510 = vmatmul.mubr.bf16.gmra.mrb[12].mxu0 %v1316_v24 }
  0xa4   : > { %519 = vmatprep.mubr.bf16.mxu0 %v1566_v0 }
  0xab   : > { %520 = vmatmul.mubr.bf16.gmra.mrb[16].mxu0 %v1317_v25 }
  0xac   : > { %529 = vmatprep.mubr.bf16.mxu0 %v1566_v0 }
  0xb3   : > { %530 = vmatmul.mubr.bf16.gmra.mrb[20].mxu0 %v1318_v26 }
  0xb4   : > { %539 = vmatprep.mubr.bf16.mxu0 %v1566_v0 }
  0xbb   : > { %540 = vmatmul.mubr.bf16.gmra.mrb[24].mxu0 %v1319_v27 }
  0xbc   : > { %549 = vmatprep.mubr.bf16.mxu0 %v1566_v0 }
  0xc3   : > { %550 = vmatmul.mubr.bf16.gmra.mrb[28].mxu0 %v1320_v28 }
 0x15e   : > { %v481_v48 = vpop.f32.mrb[0].mxu0 }
 0x15f   : > { %v482_v49 = vadd.f32 %v481_v48, %v1803_v46  ;;  %v483_v50 = vpop.f32.mrb[1].mxu0 }
 0x160   : > { %v484_v51 = vadd.f32 %v483_v50, %v1805_v47  ;;  %v485_v52 = vpop.f32.mrb[2].mxu0 }
 0x161   : > { %v592_v53 = vmul.f32 0.70710677, %v482_v49  ;;  %v486_v54 = vadd.f32 %v485_v52, %v1803_v46  ;;  %v487_v55 = vpop.f32.mrb[3].mxu0  ;;  %v560_v12 = vmul.f32 0.5, %v482_v49 }
 0x162   : > { %v593_v56 = vmul.f32 0.70710677, %v484_v51  ;;  %v488_v57 = vadd.f32 %v487_v55, %v1805_v47  ;;  %v561_v22 = vmul.f32 0.5, %v484_v51 }
 0x163   : > { %1337 = verf.f32 %v592_v53  ;;  %v594_v58 = vmul.f32 0.70710677, %v486_v54  ;;  %v562_v17 = vmul.f32 0.5, %v486_v54 }
 0x164   : > { %1339 = verf.f32 %v593_v56  ;;  %v595_v59 = vmul.f32 0.70710677, %v488_v57  ;;  %v563_v28 = vmul.f32 0.5, %v488_v57 }
 0x165   : > { %1341 = verf.f32 %v594_v58 }
 0x166   : > { %1343 = verf.f32 %v595_v59  ;;  %v491_v60 = vpop.f32.mrb[4].mxu0 }
 0x167   : > { %v492_v61 = vadd.f32 %v491_v60, %v1803_v46  ;;  %v493_v62 = vpop.f32.mrb[5].mxu0 }
 0x168   : > { %v494_v63 = vadd.f32 %v493_v62, %v1805_v47  ;;  %v495_v0 = vpop.f32.mrb[6].mxu0 }
 0x169   : > { %v596_v1 = vmul.f32 0.70710677, %v492_v61  ;;  %v496_v2 = vadd.f32 %v495_v0, %v1803_v46  ;;  %v497_v3 = vpop.f32.mrb[7].mxu0  ;;  %v564_v49 = vmul.f32 0.5, %v492_v61 }
 0x16a   : > { %v597_v4 = vmul.f32 0.70710677, %v494_v63  ;;  %v498_v5 = vadd.f32 %v497_v3, %v1805_v47  ;;  %v565_v54 = vmul.f32 0.5, %v494_v63 }
 0x16b   : > { %1345 = verf.f32 %v596_v1  ;;  %v598_v6 = vmul.f32 0.70710677, %v496_v2  ;;  %v566_v50 = vmul.f32 0.5, %v496_v2 }
 0x16c   : > { %1347 = verf.f32 %v597_v4  ;;  %v599_v7 = vmul.f32 0.70710677, %v498_v5  ;;  %v567_v55 = vmul.f32 0.5, %v498_v5 }
 0x16d   : > { %v1338_v8 = vpop.eup %1337  ;;  %1349 = verf.f32 %v598_v6 }
 0x16e   : > { %v1340_v9 = vpop.eup %1339  ;;  %1351 = verf.f32 %v599_v7  ;;  %v501_v10 = vpop.f32.mrb[8].mxu0  ;;  %v656_v13 = vadd.f32 1.0, %v1338_v8 }
 0x16f   : > { %v1342_v11 = vpop.eup %1341  ;;  %v1816_v14 = vadd.f32 %v501_v10, %v1803_v46  ;;  %v503_v15 = vpop.f32.mrb[9].mxu0  ;;  %v657_v21 = vadd.f32 1.0, %v1340_v9 }
 0x170   : > { %v1344_v16 = vpop.eup %1343  ;;  %v658_v18 = vadd.f32 1.0, %v1342_v11  ;;  %v1819_v19 = vadd.f32 %v503_v15, %v1805_v47  ;;  %v505_v20 = vpop.f32.mrb[10].mxu0  ;;  %v688_v31 = vmul.f32 %v656_v13, %v560_v12 }
 0x171   : > { %v600_v23 = vmul.f32 0.70710677, %v1816_v14  ;;  %v1823_v24 = vadd.f32 %v505_v20, %v1803_v46  ;;  %v507_v25 = vpop.f32.mrb[11].mxu0  ;;  %v659_v26 = vadd.f32 1.0, %v1344_v16  ;;  %v689_v34 = vmul.f32 %v657_v21, %v561_v22 }
 0x172   : > { %v690_v27 = vmul.f32 %v658_v18, %v562_v17  ;;  %v601_v29 = vmul.f32 0.70710677, %v1819_v19  ;;  %v1827_v30 = vadd.f32 %v507_v25, %v1805_v47  ;;  %v568_v16 = vmul.f32 0.5, %v1816_v14 }
 0x173   : > { %1353 = verf.f32 %v600_v23  ;;  %v602_v32 = vmul.f32 0.70710677, %v1823_v24  ;;  %v691_v35 = vmul.f32 %v659_v26, %v563_v28  ;;  %v570_v17 = vmul.f32 0.5, %v1823_v24 }
 0x174   : > { %1355 = verf.f32 %v601_v29  ;;  %v603_v33 = vmul.f32 0.70710677, %v1827_v30  ;;  %v720_v37 = vpack.c.bf16 %v690_v27, %v688_v31  ;;  %v569_v22 = vmul.f32 0.5, %v1819_v19 }
 0x175   : > { %v1346_v36 = vpop.eup %1345  ;;  %1357 = verf.f32 %v602_v32  ;;  %v721_v41 = vpack.c.bf16 %v691_v35, %v689_v34  ;;  %v571_v23 = vmul.f32 0.5, %v1827_v30 }
 0x176   : > { %v1348_v38 = vpop.eup %1347  ;;  %v660_v39 = vadd.f32 1.0, %v1346_v36  ;;  %1359 = verf.f32 %v603_v33  ;;  %v511_v40 = vpop.f32.mrb[12].mxu0 }
 0x177   : > { %v1350_v42 = vpop.eup %1349  ;;  %v661_v43 = vadd.f32 1.0, %v1348_v38  ;;  %v1832_v44 = vadd.f32 %v511_v40, %v1803_v46  ;;  %v513_v45 = vpop.f32.mrb[13].mxu0  ;;  %903 = vmatprep.mubr.bf16.mxu1 %v721_v41 }
 0x178   : > { %v1352_v48 = vpop.eup %1351  ;;  %v662_v51 = vadd.f32 1.0, %v1350_v42  ;;  %v1835_v52 = vadd.f32 %v513_v45, %v1805_v47  ;;  %v515_v53 = vpop.f32.mrb[14].mxu0  ;;  %904 = vmatmul.mubr.bf16.vlgmr.msra.gmra.mrb[0].mxu1 %v720_v37  ;;  %v692_v59 = vmul.f32 %v660_v39, %v564_v49 }
 0x179   : > { %v663_v56 = vadd.f32 1.0, %v1352_v48  ;;  %v604_v57 = vmul.f32 0.70710677, %v1832_v44  ;;  %v517_v58 = vpop.f32.mrb[15].mxu0  ;;  %v516_v61 = vadd.f32 %v515_v53, %v1803_v46  ;;  %v693_v0 = vmul.f32 %v661_v43, %v565_v54 }
 0x17a   : > { %v694_v60 = vmul.f32 %v662_v51, %v566_v50  ;;  %v605_v62 = vmul.f32 0.70710677, %v1835_v52  ;;  %v518_v2 = vadd.f32 %v517_v58, %v1805_v47  ;;  %v572_v43 = vmul.f32 0.5, %v1832_v44 }
 0x17b   : > { %v695_v1 = vmul.f32 %v663_v56, %v567_v55  ;;  %1361 = verf.f32 %v604_v57  ;;  %v606_v3 = vmul.f32 0.70710677, %v516_v61  ;;  %v573_v51 = vmul.f32 0.5, %v1835_v52 }
 0x17c   : > { %1363 = verf.f32 %v605_v62  ;;  %v722_v63 = vpack.c.bf16 %v694_v60, %v692_v59  ;;  %v607_v5 = vmul.f32 0.70710677, %v518_v2  ;;  %v574_v53 = vmul.f32 0.5, %v516_v61 }
 0x17d   : > { %v1354_v4 = vpop.eup %1353  ;;  %v723_v6 = vpack.c.bf16 %v695_v1, %v693_v0  ;;  %1365 = verf.f32 %v606_v3  ;;  %v575_v57 = vmul.f32 0.5, %v518_v2 }
 0x17e   : > { %v1356_v7 = vpop.eup %1355  ;;  %v664_v8 = vadd.f32 1.0, %v1354_v4  ;;  %v521_v9 = vpop.f32.mrb[16].mxu0  ;;  %1367 = verf.f32 %v607_v5 }
 0x17f   : > { %v1358_v10 = vpop.eup %1357  ;;  %v665_v11 = vadd.f32 1.0, %v1356_v7  ;;  %v1842_v12 = vadd.f32 %v521_v9, %v1803_v46  ;;  %v523_v13 = vpop.f32.mrb[17].mxu0  ;;  %911 = vmatprep.mubr.bf16.mxu1 %v723_v6 }
 0x180   : > { %v1360_v15 = vpop.eup %1359  ;;  %v666_v18 = vadd.f32 1.0, %v1358_v10  ;;  %v1847_v20 = vadd.f32 %v523_v13, %v1805_v47  ;;  %v525_v21 = vpop.f32.mrb[18].mxu0  ;;  %912 = vmatmul.mubr.bf16.gmra.mrb[4].mxu1 %v722_v63  ;;  %v696_v28 = vmul.f32 %v664_v8, %v568_v16 }
 0x181   : > { %v667_v25 = vadd.f32 1.0, %v1360_v15  ;;  %v608_v26 = vmul.f32 0.70710677, %v1842_v12  ;;  %v527_v27 = vpop.f32.mrb[19].mxu0  ;;  %v526_v24 = vadd.f32 %v525_v21, %v1803_v46  ;;  %v697_v31 = vmul.f32 %v665_v11, %v569_v22 }
 0x182   : > { %v698_v29 = vmul.f32 %v666_v18, %v570_v17  ;;  %v609_v14 = vmul.f32 0.70710677, %v1847_v20  ;;  %v528_v33 = vadd.f32 %v527_v27, %v1805_v47  ;;  %v576_v11 = vmul.f32 0.5, %v1842_v12 }
 0x183   : > { %v699_v32 = vmul.f32 %v667_v25, %v571_v23  ;;  %1369 = verf.f32 %v608_v26  ;;  %v610_v19 = vmul.f32 0.70710677, %v526_v24  ;;  %v577_v18 = vmul.f32 0.5, %v1847_v20 }
 0x184   : > { %1371 = verf.f32 %v609_v14  ;;  %v724_v34 = vpack.c.bf16 %v698_v29, %v696_v28  ;;  %v611_v35 = vmul.f32 0.70710677, %v528_v33  ;;  %v578_v21 = vmul.f32 0.5, %v526_v24 }
 0x185   : > { %v1362_v30 = vpop.eup %1361  ;;  %v725_v36 = vpack.c.bf16 %v699_v32, %v697_v31  ;;  %1373 = verf.f32 %v610_v19  ;;  %v579_v26 = vmul.f32 0.5, %v528_v33 }
 0x186   : > { %v1364_v37 = vpop.eup %1363  ;;  %v531_v38 = vpop.f32.mrb[20].mxu0  ;;  %v668_v39 = vadd.f32 1.0, %v1362_v30  ;;  %1375 = verf.f32 %v611_v35 }
 0x187   : > { %v1856_v40 = vadd.f32 %v531_v38, %v1803_v46  ;;  %v533_v41 = vpop.f32.mrb[21].mxu0  ;;  %919 = vmatprep.mubr.bf16.mxu1 %v725_v36  ;;  %v1366_v42 = vpop.eup %1365  ;;  %v669_v45 = vadd.f32 1.0, %v1364_v37 }
 0x188   : > { %v1860_v48 = vadd.f32 %v533_v41, %v1805_v47  ;;  %v535_v49 = vpop.f32.mrb[22].mxu0  ;;  %v1368_v50 = vpop.eup %1367  ;;  %v670_v54 = vadd.f32 1.0, %v1366_v42  ;;  %920 = vmatmul.mubr.bf16.gmra.mrb[8].mxu1 %v724_v34  ;;  %v700_v60 = vmul.f32 %v668_v39, %v572_v43 }
 0x189   : > { %v612_v55 = vmul.f32 0.70710677, %v1856_v40  ;;  %v537_v56 = vpop.f32.mrb[23].mxu0  ;;  %v671_v58 = vadd.f32 1.0, %v1368_v50  ;;  %v1866_v44 = vadd.f32 %v535_v49, %v1803_v46  ;;  %v701_v52 = vmul.f32 %v669_v45, %v573_v51 }
 0x18a   : > { %v613_v59 = vmul.f32 0.70710677, %v1860_v48  ;;  %v702_v62 = vmul.f32 %v670_v54, %v574_v53  ;;  %v1869_v0 = vadd.f32 %v537_v56, %v1805_v47  ;;  %v580_v42 = vmul.f32 0.5, %v1856_v40 }
 0x18b   : > { %1377 = verf.f32 %v612_v55  ;;  %v703_v61 = vmul.f32 %v671_v58, %v575_v57  ;;  %v614_v1 = vmul.f32 0.70710677, %v1866_v44  ;;  %v581_v51 = vmul.f32 0.5, %v1860_v48 }
 0x18c   : > { %1379 = verf.f32 %v613_v59  ;;  %v615_v2 = vmul.f32 0.70710677, %v1869_v0  ;;  %v726_v63 = vpack.c.bf16 %v702_v62, %v700_v60  ;;  %v582_v53 = vmul.f32 0.5, %v1866_v44 }
 0x18d   : > { %v1370_v3 = vpop.eup %1369  ;;  %1381 = verf.f32 %v614_v1  ;;  %v727_v6 = vpack.c.bf16 %v703_v61, %v701_v52  ;;  %v583_v57 = vmul.f32 0.5, %v1869_v0 }
 0x18e   : > { %v1372_v4 = vpop.eup %1371  ;;  %v541_v5 = vpop.f32.mrb[24].mxu0  ;;  %v672_v7 = vadd.f32 1.0, %v1370_v3  ;;  %1383 = verf.f32 %v615_v2 }
 0x18f   : > { %v1874_v8 = vadd.f32 %v541_v5, %v1803_v46  ;;  %v543_v9 = vpop.f32.mrb[25].mxu0  ;;  %v1374_v10 = vpop.eup %1373  ;;  %v673_v13 = vadd.f32 1.0, %v1372_v4  ;;  %927 = vmatprep.mubr.bf16.mxu1 %v727_v6 }
 0x190   : > { %v1878_v15 = vadd.f32 %v543_v9, %v1805_v47  ;;  %v545_v16 = vpop.f32.mrb[26].mxu0  ;;  %v1376_v17 = vpop.eup %1375  ;;  %v674_v22 = vadd.f32 1.0, %v1374_v10  ;;  %928 = vmatmul.mubr.bf16.gmra.mrb[12].mxu1 %v726_v63  ;;  %v704_v29 = vmul.f32 %v672_v7, %v576_v11 }
 0x191   : > { %v616_v23 = vmul.f32 0.70710677, %v1874_v8  ;;  %v547_v25 = vpop.f32.mrb[27].mxu0  ;;  %v675_v27 = vadd.f32 1.0, %v1376_v17  ;;  %v546_v12 = vadd.f32 %v545_v16, %v1803_v46  ;;  %v705_v32 = vmul.f32 %v673_v13, %v577_v18 }
 0x192   : > { %v617_v28 = vmul.f32 0.70710677, %v1878_v15  ;;  %v706_v14 = vmul.f32 %v674_v22, %v578_v21  ;;  %v548_v31 = vadd.f32 %v547_v25, %v1805_v47  ;;  %v584_v7 = vmul.f32 0.5, %v1874_v8 }
 0x193   : > { %1385 = verf.f32 %v616_v23  ;;  %v707_v19 = vmul.f32 %v675_v27, %v579_v26  ;;  %v618_v20 = vmul.f32 0.70710677, %v546_v12  ;;  %v586_v9 = vmul.f32 0.5, %v546_v12 }
 0x194   : > { %1387 = verf.f32 %v617_v28  ;;  %v619_v34 = vmul.f32 0.70710677, %v548_v31  ;;  %v728_v30 = vpack.c.bf16 %v706_v14, %v704_v29  ;;  %v585_v10 = vmul.f32 0.5, %v1878_v15 }
 0x195   : > { %v1378_v24 = vpop.eup %1377  ;;  %1389 = verf.f32 %v618_v20  ;;  %v729_v36 = vpack.c.bf16 %v707_v19, %v705_v32  ;;  %v587_v11 = vmul.f32 0.5, %v548_v31 }
 0x196   : > { %v1380_v35 = vpop.eup %1379  ;;  %v551_v33 = vpop.f32.mrb[28].mxu0  ;;  %v676_v37 = vadd.f32 1.0, %v1378_v24  ;;  %1391 = verf.f32 %v619_v34 }
 0x197   : > { %v552_v38 = vadd.f32 %v551_v33, %v1803_v46  ;;  %v553_v39 = vpop.f32.mrb[29].mxu0  ;;  %v1382_v41 = vpop.eup %1381  ;;  %v677_v43 = vadd.f32 1.0, %v1380_v35  ;;  %935 = vmatprep.mubr.bf16.mxu1 %v729_v36 }
 0x198   : > { %v554_v45 = vadd.f32 %v553_v39, %v1805_v47  ;;  %v555_v49 = vpop.f32.mrb[30].mxu0  ;;  %v1384_v50 = vpop.eup %1383  ;;  %v678_v54 = vadd.f32 1.0, %v1382_v41  ;;  %936 = vmatmul.mubr.bf16.gmra.mrb[16].mxu1 %v728_v30  ;;  %v708_v60 = vmul.f32 %v676_v37, %v580_v42  ;;  %v1899_v37 = vld [vmem:[%s1990_s4] ss:$0 sm:$0xff] }
 0x199   : > { %v620_v55 = vmul.f32 0.70710677, %v552_v38  ;;  %v557_v56 = vpop.f32.mrb[31].mxu0  ;;  %v679_v58 = vadd.f32 1.0, %v1384_v50  ;;  %v556_v40 = vadd.f32 %v555_v49, %v1803_v46  ;;  %v709_v61 = vmul.f32 %v677_v43, %v581_v51 }
 0x19a   : > { %v621_v59 = vmul.f32 0.70710677, %v554_v45  ;;  %v710_v62 = vmul.f32 %v678_v54, %v582_v53  ;;  %v558_v52 = vadd.f32 %v557_v56, %v1805_v47  ;;  %v588_v12 = vmul.f32 0.5, %v552_v38 }
 0x19b   : > { %1393 = verf.f32 %v620_v55  ;;  %v711_v1 = vmul.f32 %v679_v58, %v583_v57  ;;  %v622_v48 = vmul.f32 0.70710677, %v556_v40  ;;  %v590_v14 = vmul.f32 0.5, %v556_v40 }
 0x19c   : > { %1395 = verf.f32 %v621_v59  ;;  %v623_v3 = vmul.f32 0.70710677, %v558_v52  ;;  %v730_v2 = vpack.c.bf16 %v710_v62, %v708_v60  ;;  %v589_v15 = vmul.f32 0.5, %v554_v45 }
 0x19d   : > { %v1386_v44 = vpop.eup %1385  ;;  %1397 = verf.f32 %v622_v48  ;;  %v731_v4 = vpack.c.bf16 %v711_v1, %v709_v61  ;;  %v591_v31 = vmul.f32 0.5, %v558_v52 }
 0x19e   : > { %v1388_v63 = vpop.eup %1387  ;;  %v680_v0 = vadd.f32 1.0, %v1386_v44  ;;  %1399 = verf.f32 %v623_v3 }
 0x19f   : > { %v1390_v5 = vpop.eup %1389  ;;  %v681_v6 = vadd.f32 1.0, %v1388_v63  ;;  %943 = vmatprep.mubr.bf16.mxu1 %v731_v4 }
 0x1a0   : > { %v1392_v46 = vpop.eup %1391  ;;  %v682_v47 = vadd.f32 1.0, %v1390_v5  ;;  %944 = vmatmul.mubr.bf16.gmra.mrb[20].mxu1 %v730_v2  ;;  %v712_v16 = vmul.f32 %v680_v0, %v584_v7 }
 0x1a1   : > { %v683_v13 = vadd.f32 1.0, %v1392_v46  ;;  %v713_v18 = vmul.f32 %v681_v6, %v585_v10 }
 0x1a2   : > { %v714_v17 = vmul.f32 %v682_v47, %v586_v9 }
 0x1a3   : > { %v715_v21 = vmul.f32 %v683_v13, %v587_v11 }
 0x1a4   : > { %v732_v23 = vpack.c.bf16 %v714_v17, %v712_v16 }
 0x1a5   : > { %v1394_v22 = vpop.eup %1393  ;;  %v733_v26 = vpack.c.bf16 %v715_v21, %v713_v18 }
 0x1a6   : > { %v1396_v25 = vpop.eup %1395  ;;  %v684_v27 = vadd.f32 1.0, %v1394_v22 }
 0x1a7   : > { %v1398_v28 = vpop.eup %1397  ;;  %v685_v29 = vadd.f32 1.0, %v1396_v25  ;;  %951 = vmatprep.mubr.bf16.mxu1 %v733_v26 }
 0x1a8   : > { %v1400_v8 = vpop.eup %1399  ;;  %v686_v32 = vadd.f32 1.0, %v1398_v28  ;;  %952 = vmatmul.mubr.bf16.gmra.mrb[24].mxu1 %v732_v23  ;;  %v716_v20 = vmul.f32 %v684_v27, %v588_v12 }
 0x1a9   : > { %v687_v19 = vadd.f32 1.0, %v1400_v8  ;;  %v717_v34 = vmul.f32 %v685_v29, %v589_v15 }
 0x1aa   : > { %v718_v24 = vmul.f32 %v686_v32, %v590_v14 }
 0x1ab   : > { %v719_v30 = vmul.f32 %v687_v19, %v591_v31 }
 0x1ac   : > { %v734_v35 = vpack.c.bf16 %v718_v24, %v716_v20 }
 0x1ad   : > { %v735_v33 = vpack.c.bf16 %v719_v30, %v717_v34 }
 0x1af   : > { %959 = vmatprep.mubr.bf16.mxu1 %v735_v33 }
 0x1b0   : > { %960 = vmatmul.mubr.bf16.gmra.mrb[28].mxu1 %v734_v35 }
 0x24b   : > { %v1167_v36 = vpop.f32.mrb[0].mxu1 }
 0x24c   : > { %v1168_v38 = vpop.f32.mrb[1].mxu1 }
 0x24d   : > { %v1169_v39 = vadd.f32 %v1168_v38, %v1167_v36  ;;  %v1170_v41 = vpop.f32.mrb[2].mxu1 }
 0x24e   : > { %v1171_v42 = vpop.f32.mrb[3].mxu1 }
 0x24f   : > { %v906_v43 = vadd.f32 %v1169_v39, %v1899_v37  ;;  %v1172_v45 = vadd.f32 %v1171_v42, %v1170_v41 }
 0x251   : > { %968 = vst [vmem:[%s1902_s28] sm:$0xff] %v906_v43  ;;  %v909_v49 = vadd.f32 %v1172_v45, %v1899_v37 }
 0x253   : > { %969 = vst [vmem:[%s1902_s28 + $0x8] sm:$0xff] %v909_v49  ;;  %v1173_v50 = vpop.f32.mrb[4].mxu1 }
 0x254   : > { %v1174_v51 = vpop.f32.mrb[5].mxu1 }
 0x255   : > { %v1175_v53 = vadd.f32 %v1174_v51, %v1173_v50  ;;  %v1176_v54 = vpop.f32.mrb[6].mxu1 }
 0x256   : > { %v1177_v55 = vpop.f32.mrb[7].mxu1 }
 0x257   : > { %v914_v56 = vadd.f32 %v1175_v53, %v1899_v37  ;;  %v1178_v57 = vadd.f32 %v1177_v55, %v1176_v54 }
 0x259   : > { %970 = vst [vmem:[%s1902_s28 + $0x10] sm:$0xff] %v914_v56  ;;  %v917_v58 = vadd.f32 %v1178_v57, %v1899_v37 }
 0x25b   : > { %971 = vst [vmem:[%s1902_s28 + $0x18] sm:$0xff] %v917_v58  ;;  %v1179_v59 = vpop.f32.mrb[8].mxu1 }
 0x25c   : > { %v1180_v40 = vpop.f32.mrb[9].mxu1 }
 0x25d   : > { %v1181_v60 = vadd.f32 %v1180_v40, %v1179_v59  ;;  %v1182_v62 = vpop.f32.mrb[10].mxu1 }
 0x25e   : > { %v1183_v52 = vpop.f32.mrb[11].mxu1 }
 0x25f   : > { %v922_v61 = vadd.f32 %v1181_v60, %v1899_v37  ;;  %v1184_v1 = vadd.f32 %v1183_v52, %v1182_v62 }
 0x261   : > { %972 = vst [vmem:[%s1902_s28 + $0x20] sm:$0xff] %v922_v61  ;;  %v925_v48 = vadd.f32 %v1184_v1, %v1899_v37 }
 0x263   : > { %973 = vst [vmem:[%s1902_s28 + $0x28] sm:$0xff] %v925_v48  ;;  %v1185_v44 = vpop.f32.mrb[12].mxu1 }
 0x264   : > { %v1186_v3 = vpop.f32.mrb[13].mxu1 }
 0x265   : > { %v1187_v2 = vadd.f32 %v1186_v3, %v1185_v44  ;;  %v1188_v63 = vpop.f32.mrb[14].mxu1 }
 0x266   : > { %v1189_v4 = vpop.f32.mrb[15].mxu1 }
 0x267   : > { %v930_v0 = vadd.f32 %v1187_v2, %v1899_v37  ;;  %v1190_v5 = vadd.f32 %v1189_v4, %v1188_v63 }
 0x269   : > { %974 = vst [vmem:[%s1902_s28 + $0x30] sm:$0xff] %v930_v0  ;;  %v933_v6 = vadd.f32 %v1190_v5, %v1899_v37 }
 0x26b   : > { %975 = vst [vmem:[%s1902_s28 + $0x38] sm:$0xff] %v933_v6  ;;  %v1191_v46 = vpop.f32.mrb[16].mxu1 }
 0x26c   : > { %v1192_v7 = vpop.f32.mrb[17].mxu1 }
 0x26d   : > { %v1193_v9 = vadd.f32 %v1192_v7, %v1191_v46  ;;  %v1194_v47 = vpop.f32.mrb[18].mxu1 }
 0x26e   : > { %v1195_v10 = vpop.f32.mrb[19].mxu1 }
 0x26f   : > { %v938_v11 = vadd.f32 %v1193_v9, %v1899_v37  ;;  %v1196_v13 = vadd.f32 %v1195_v10, %v1194_v47 }
 0x271   : > { %976 = vst [vmem:[%s1902_s28 + $0x40] sm:$0xff] %v938_v11  ;;  %v941_v16 = vadd.f32 %v1196_v13, %v1899_v37 }
 0x273   : > { %977 = vst [vmem:[%s1902_s28 + $0x48] sm:$0xff] %v941_v16  ;;  %v1197_v17 = vpop.f32.mrb[20].mxu1 }
 0x274   : > { %v1198_v18 = vpop.f32.mrb[21].mxu1 }
 0x275   : > { %v1199_v21 = vadd.f32 %v1198_v18, %v1197_v17  ;;  %v1200_v22 = vpop.f32.mrb[22].mxu1 }
 0x276   : > { %v1201_v23 = vpop.f32.mrb[23].mxu1 }
 0x277   : > { %v946_v25 = vadd.f32 %v1199_v21, %v1899_v37  ;;  %v1202_v26 = vadd.f32 %v1201_v23, %v1200_v22 }
 0x279   : > { %978 = vst [vmem:[%s1902_s28 + $0x50] sm:$0xff] %v946_v25  ;;  %v949_v27 = vadd.f32 %v1202_v26, %v1899_v37 }
 0x27b   : > { %979 = vst [vmem:[%s1902_s28 + $0x58] sm:$0xff] %v949_v27  ;;  %v1203_v28 = vpop.f32.mrb[24].mxu1 }
 0x27c   : > { %v1204_v29 = vpop.f32.mrb[25].mxu1 }
 0x27d   : > { %v1205_v8 = vadd.f32 %v1204_v29, %v1203_v28  ;;  %v1206_v12 = vpop.f32.mrb[26].mxu1 }
 0x27e   : > { %v1207_v14 = vpop.f32.mrb[27].mxu1 }
 0x27f   : > { %v954_v32 = vadd.f32 %v1205_v8, %v1899_v37  ;;  %v1208_v15 = vadd.f32 %v1207_v14, %v1206_v12 }
 0x281   : > { %980 = vst [vmem:[%s1902_s28 + $0x60] sm:$0xff] %v954_v32  ;;  %v957_v31 = vadd.f32 %v1208_v15, %v1899_v37 }
 0x283   : > { %981 = vst [vmem:[%s1902_s28 + $0x68] sm:$0xff] %v957_v31  ;;  %v1209_v19 = vpop.f32.mrb[28].mxu1 }
 0x284   : > { %v1210_v20 = vpop.f32.mrb[29].mxu1 }
 0x285   : > { %v1211_v24 = vadd.f32 %v1210_v20, %v1209_v19  ;;  %v1212_v34 = vpop.f32.mrb[30].mxu1 }
 0x286   : > { %v1213_v30 = vpop.f32.mrb[31].mxu1 }
 0x287   : > { %v962_v35 = vadd.f32 %v1211_v24, %v1899_v37  ;;  %v1214_v33 = vadd.f32 %v1213_v30, %v1212_v34 }
 0x289   : > { %982 = vst [vmem:[%s1902_s28 + $0x70] sm:$0xff] %v962_v35  ;;  %v965_v36 = vadd.f32 %v1214_v33, %v1899_v37 }
 0x28b   : > { %983 = vst [vmem:[%s1902_s28 + $0x78] sm:$0xff] %v965_v36 }
 0x28c   : > { %1500 = shalt.err (!%p1497_p2)
}
 0x28d   : > { %s1501_s24 = scalar_lea.hbm %s1937_s23, 2048  ;;  %s1505_s13 = scalar_lea.hbm %s1991_s5, 4096 }
 0x28e   : > { %p1502_p13 = scmp.ne.s32.totalorder %s1937_s23, %s1501_s24  ;;  %p1506_p4 = scmp.lt.u32.totalorder %s1937_s23, %s1991_s5 }
 0x28f   : > { %p1507_p7 = scmp.lt.u32.totalorder %s1505_s13, %s1501_s24  ;;  %p1509_p11 = scmp.lt.u32.totalorder %s1501_s24, %s1937_s23 }
 0x290   : > { %p1503_p6 = pnand %p1502_p13, %p2005_p0 }
 0x291   : > { %p1508_p8 = por %p1507_p7, %p1506_p4 }
 0x292   : > { %p1504_p10 = pneg %p1503_p6 }
 0x293   : > { %p1510_p1 = por %p1509_p11, %p1508_p8 }
 0x295   : > { %p1511_p3 = pnand %p1510_p1, %p1504_p10 }
 0x297   : > { %1514 = shalt.err (!%p1511_p3)
}
 0x298   : > { %s1568_s14 = smov 128   ;;  %s1569_s30 = smov 8  }
 0x299   : > { %1225 = dma.vmem_to_hbm [thread:$0]  (%p2005_p0), %s1939_s15, 2048, %s1937_s23, %s985_s22, %s1568_s14, %s1568_s14, %s1569_s30  }
 0x29a PF: > { %s1013_s11 = sand.u32 1, %s1545_s18   ;;  %p2006_p5 = scmp.ne.s32.totalorder %s1996_s25, 0 }
 0x29b   : > { %p2007_p9 = scmp.ge.s32.totalorder %s1557_s21, 2  ;;  %s1014_s7 = scalar_lea.sflag [#allocation4], %s1013_s11 }
 0x29d   : > { %p1239_p12 = pnand %p2007_p9, %p2006_p5 }
 0x29f   : > { %1540 = dma.done.wait (!%p1239_p12), %s1014_s7, 2048  }
 0x2a0   : > { %1542 = vsyncadd (!%p1239_p12), %s1014_s7, 4294965248  ;;  %p19_p2 = scmp.ge.s32.totalorder %s1713_s16, 4   ;;  %s2008_s18 = smov %s1549_s19 }
 0x2a1   : > { %s2009_s19 = smov %s1553_s20  ;;  %s2010_s20 = smov %s1722_s27 }
 0x2a2   : > { %s2011_s21 = smov %s1713_s16  ;;  %21 = sbr.rel (!%p19_p2) target bundleno = 6 (0x6), region = 93 }
 0x2a9   :  { %1019 = vsyncpa [#allocation3], 1 }
 0x2aa   :  { %1021 = vsyncpa [#allocation3 + $0x1], 1 }
 0x2ab   :  { %1022 = vsyncpa [#allocation6], 1 }
 0x2ac   :  { %1023 = vsyncpa [#allocation4], 1 }
 0x2ad   :  { %1025 = vsyncpa [#allocation4 + $0x1], 1 }

</bundles_post_ra>
